<compile_context>
chip_gen: v6e
topology: v6e:2x2x1
jax: 0.10.0
libtpu: 0.0.40
codegen_flags: <defaults>
</compile_context>

<pallas_src>
import functools

import jax
import jax.numpy as jnp
from jax.experimental import pallas as pl
from jax.experimental.pallas import tpu as pltpu


def _rope_kernel(x_ref, cos_ref, sin_ref, o_ref, *, half):
    # x_ref: (TS, H, D); cos_ref/sin_ref: (TS, D).
    # out = x * cos + rotate_half(x) * sin
    #     = [x1*c1 - x2*s1, x2*c2 + x1*s2]   with x = [x1, x2], etc.
    x = x_ref[...].astype(jnp.float32)
    cos = cos_ref[...].astype(jnp.float32)[:, None, :]   # (TS, 1, D)
    sin = sin_ref[...].astype(jnp.float32)[:, None, :]   # (TS, 1, D)

    x1 = x[..., :half]
    x2 = x[..., half:]
    c1 = cos[..., :half]
    c2 = cos[..., half:]
    s1 = sin[..., :half]
    s2 = sin[..., half:]

    out = jnp.concatenate(
        [x1 * c1 - x2 * s1,
         x2 * c2 + x1 * s2],
        axis=-1,
    )
    o_ref[...] = out.astype(o_ref.dtype)


def _pick_seq_tile(seq_len, num_heads, head_dim, itemsize,
                   target_block_bytes=2 * 1024 * 1024):
    """Largest sequence tile whose (TS, H, D) block is <= ~2 MiB, divides S and
    is a multiple of 8 (keeps the (TS, D) cos/sin blocks sublane aligned).
    Double-buffered in + out blocks then total ~8-9 MiB, comfortably inside the
    scoped VMEM budget on v5e/v6e/v7x."""
    row_bytes = max(1, num_heads * head_dim * itemsize)
    max_rows = max(1, target_block_bytes // row_bytes)
    if max_rows >= seq_len:
        return seq_len
    ts = (max_rows // 8) * 8
    while ts >= 8:
        if seq_len % ts == 0:
            return ts
        ts -= 8
    # TODO(synk): ragged sequence lengths (S not a multiple of 8) fall back to a
    # single whole-sequence tile instead of masked partial blocks.
    return seq_len


def apply_rotary_pos_emb_pallas(x, cos, sin):
    B, S, H, D = x.shape
    assert D % 2 == 0, "head_dim must be even for RoPE"
    half = D // 2

    cos = cos.astype(x.dtype)
    sin = sin.astype(x.dtype)

    ts = _pick_seq_tile(S, H, D, x.dtype.itemsize)
    n_s = S // ts

    kernel = functools.partial(_rope_kernel, half=half)

    return pl.pallas_call(
        kernel,
        out_shape=jax.ShapeDtypeStruct((B, S, H, D), x.dtype),
        grid_spec=pltpu.PrefetchScalarGridSpec(
            num_scalar_prefetch=0,
            # S outer, B inner: cos/sin block index is constant across the fast
            # (batch) axis, so Pallas skips re-DMA of the tables per batch step.
            grid=(n_s, B),
            in_specs=[
                pl.BlockSpec((None, ts, H, D), lambda s, b: (b, s, 0, 0)),
                pl.BlockSpec((ts, D), lambda s, b: (s, 0)),
                pl.BlockSpec((ts, D), lambda s, b: (s, 0)),
            ],
            out_specs=pl.BlockSpec((None, ts, H, D), lambda s, b: (b, s, 0, 0)),
        ),
        compiler_params=pltpu.CompilerParams(
            # Pure streaming elementwise kernel (no reduction): both axes are
            # parallel so the grid can be sharded across TensorCores on v7x.
            dimension_semantics=("parallel", "parallel"),
            vmem_limit_bytes=32 * 1024 * 1024,
        ),
    )(x, cos, sin)


class NTKAwareRoPE:
    """JAX/Pallas port of the PyTorch NTKAwareRoPE module (no learnable params)."""

    def __init__(self, dim, max_seq_len, base=10000, ratio=1, dynamic=False,
                 dtype=jnp.float32):
        self.dim = dim
        self.max_seq_len = max_seq_len
        self.base = base
        self.ratio = ratio
        self.dynamic = dynamic
        self.dtype = dtype
        self.compute_positional_embeddings(max_seq_len)

    def _cos_sin(self, seq_len, ratio):
        base = self.base * ratio ** (self.dim / (self.dim - 2))
        inv_freq = 1.0 / base ** (
            jnp.arange(0, self.dim, 2, dtype=self.dtype) / self.dim)
        t = jnp.arange(seq_len, dtype=self.dtype)
        freqs = jnp.outer(t, inv_freq)
        emb = jnp.concatenate((freqs, freqs), axis=-1)
        return jnp.cos(emb), jnp.sin(emb)

    def compute_positional_embeddings(self, seq_len):
        self.max_seq_len = seq_len
        self.cos, self.sin = self._cos_sin(seq_len, self.ratio)

    def __call__(self, x, offset: int = 0):
        B, S, H, D = x.shape
        if S > self.max_seq_len:
            k_ = 0
            for new_k in range(self.ratio, S):
                if new_k * self.max_seq_len >= S and new_k % 2 == 0:
                    k_ = new_k
                    break
            assert k_ != 0, "Cannot find a new scaling ratio."
            new_max_seq_len = self.max_seq_len * k_
            if self.dynamic:
                self.ratio = k_
                self.compute_positional_embeddings(new_max_seq_len)
            else:
                C_, S_ = self._cos_sin(new_max_seq_len, k_)
                assert offset + S <= new_max_seq_len, (
                    "offset + seq_len exceeds the extrapolated table length")
                return apply_rotary_pos_emb_pallas(
                    x, C_[offset:S + offset], S_[offset:S + offset])
        assert offset + S <= self.max_seq_len, (
            "offset + seq_len exceeds the cached cos/sin table length")
        return apply_rotary_pos_emb_pallas(
            x, self.cos[offset:S + offset], self.sin[offset:S + offset])


def _reference_rope(x, cos, sin):
    half = x.shape[-1] // 2
    x1, x2 = x[..., :half], x[..., half:]
    rot = jnp.concatenate([-x2, x1], axis=-1)
    return x * cos[None, :, None, :] + rot * sin[None, :, None, :]


if __name__ == "__main__":
    key = jax.random.PRNGKey(0)
    k1, k2 = jax.random.split(key, 2)

    # Test 1: lane-dense head_dim (D=128), plus a nonzero offset.
    batch, seq, heads, head_dim = 2, 8, 8, 128
    max_seq_len = 16
    x = jax.random.normal(k1, (batch, seq, heads, head_dim), dtype=jnp.float32)
    rope = NTKAwareRoPE(dim=head_dim, max_seq_len=max_seq_len)

    out = jax.block_until_ready(rope(x, offset=0))
    ref = _reference_rope(x, rope.cos[:seq], rope.sin[:seq])
    assert out.shape == x.shape and out.dtype == x.dtype
    assert jnp.allclose(out, ref, atol=1e-5, rtol=1e-5), "mismatch (offset=0)"

    out_off = jax.block_until_ready(rope(x, offset=5))
    ref_off = _reference_rope(x, rope.cos[5:seq + 5], rope.sin[5:seq + 5])
    assert jnp.allclose(out_off, ref_off, atol=1e-5, rtol=1e-5), "mismatch (offset=5)"

    # Test 2: extrapolation path (seq_len > max_seq_len, non-dynamic) with a
    # smaller, non-lane-aligned head_dim.
    head_dim2, heads2 = 32, 4
    rope2 = NTKAwareRoPE(dim=head_dim2, max_seq_len=max_seq_len)
    seq_long = max_seq_len + 4   # 20 -> scaling ratio k_=2, new_max_seq_len=32
    x_long = jax.random.normal(k2, (batch, seq_long, heads2, head_dim2),
                               dtype=jnp.float32)
    out_long = jax.block_until_ready(rope2(x_long, offset=0))
    c_long, s_long = rope2._cos_sin(max_seq_len * 2, 2)
    ref_long = _reference_rope(x_long, c_long[:seq_long], s_long[:seq_long])
    assert out_long.shape == x_long.shape and out_long.dtype == x_long.dtype
    assert jnp.allclose(out_long, ref_long, atol=1e-5, rtol=1e-5), (
        "mismatch (extrapolation)")

    print("KERNEL_OK")
</pallas_src>

<mosaic_0001>
module attributes {stable_mosaic.version = 11 : i64} {
  func.func @_rope_kernel(%arg0: i32, %arg1: i32, %arg2: memref<1x8x8x128xf32, #tpu.memory_space<vmem>>, %arg3: memref<8x128xf32, #tpu.memory_space<vmem>>, %arg4: memref<8x128xf32, #tpu.memory_space<vmem>>, %arg5: memref<1x8x8x128xf32, #tpu.memory_space<vmem>>) attributes {dimension_semantics = [#tpu.dimension_semantics<parallel>, #tpu.dimension_semantics<parallel>], iteration_bounds = array<i64: 1, 2>, scalar_prefetch = 0 : i64, scratch_operands = 0 : i64, tpu.core_type = #tpu.core_type<tc>, window_params = [{transform_indices = @transform_0, window_bounds = array<i64: 1, 8, 8, 128>}, {transform_indices = @transform_1, window_bounds = array<i64: 8, 128>}, {transform_indices = @transform_2, window_bounds = array<i64: 8, 128>}, {transform_indices = @transform_3, window_bounds = array<i64: 1, 8, 8, 128>}]} {
    %c0 = arith.constant 0 : index
    %c0_0 = arith.constant 0 : index
    %c0_1 = arith.constant 0 : index
    %c0_2 = arith.constant 0 : index
    %0 = vector.load %arg2[%c0, %c0_0, %c0_1, %c0_2] : memref<1x8x8x128xf32, #tpu.memory_space<vmem>>, vector<1x8x8x128xf32>
    %1 = vector.shape_cast %0 : vector<1x8x8x128xf32> to vector<8x8x128xf32>
    %c0_3 = arith.constant 0 : index
    %c0_4 = arith.constant 0 : index
    %2 = vector.load %arg3[%c0_3, %c0_4] : memref<8x128xf32, #tpu.memory_space<vmem>>, vector<8x128xf32>
    %3 = vector.shape_cast %2 : vector<8x128xf32> to vector<8x1x128xf32>
    %c0_5 = arith.constant 0 : index
    %c0_6 = arith.constant 0 : index
    %4 = vector.load %arg4[%c0_5, %c0_6] : memref<8x128xf32, #tpu.memory_space<vmem>>, vector<8x128xf32>
    %5 = vector.shape_cast %4 : vector<8x128xf32> to vector<8x1x128xf32>
    %6 = vector.extract_strided_slice %1 {offsets = [0, 0, 0], sizes = [8, 8, 64], strides = [1, 1, 1]} : vector<8x8x128xf32> to vector<8x8x64xf32>
    %7 = vector.extract_strided_slice %1 {offsets = [0, 0, 64], sizes = [8, 8, 64], strides = [1, 1, 1]} : vector<8x8x128xf32> to vector<8x8x64xf32>
    %8 = vector.extract_strided_slice %3 {offsets = [0, 0, 0], sizes = [8, 1, 64], strides = [1, 1, 1]} : vector<8x1x128xf32> to vector<8x1x64xf32>
    %9 = vector.extract_strided_slice %3 {offsets = [0, 0, 64], sizes = [8, 1, 64], strides = [1, 1, 1]} : vector<8x1x128xf32> to vector<8x1x64xf32>
    %10 = vector.extract_strided_slice %5 {offsets = [0, 0, 0], sizes = [8, 1, 64], strides = [1, 1, 1]} : vector<8x1x128xf32> to vector<8x1x64xf32>
    %11 = vector.extract_strided_slice %5 {offsets = [0, 0, 64], sizes = [8, 1, 64], strides = [1, 1, 1]} : vector<8x1x128xf32> to vector<8x1x64xf32>
    %12 = vector.broadcast %8 : vector<8x1x64xf32> to vector<8x8x64xf32>
    %13 = arith.mulf %6, %12 : vector<8x8x64xf32>
    %14 = vector.broadcast %10 : vector<8x1x64xf32> to vector<8x8x64xf32>
    %15 = arith.mulf %7, %14 : vector<8x8x64xf32>
    %16 = arith.subf %13, %15 : vector<8x8x64xf32>
    %17 = vector.broadcast %9 : vector<8x1x64xf32> to vector<8x8x64xf32>
    %18 = arith.mulf %7, %17 : vector<8x8x64xf32>
    %19 = vector.broadcast %11 : vector<8x1x64xf32> to vector<8x8x64xf32>
    %20 = arith.mulf %6, %19 : vector<8x8x64xf32>
    %21 = arith.addf %18, %20 : vector<8x8x64xf32>
    %22 = tpu.concatenate %16, %21 in 2 : vector<8x8x64xf32>, vector<8x8x64xf32> -> vector<8x8x128xf32>
    %c0_7 = arith.constant 0 : index
    %c0_8 = arith.constant 0 : index
    %c0_9 = arith.constant 0 : index
    %c0_10 = arith.constant 0 : index
    %23 = vector.load %arg5[%c0_7, %c0_8, %c0_9, %c0_10] : memref<1x8x8x128xf32, #tpu.memory_space<vmem>>, vector<1x8x8x128xf32>
    %24 = vector.shape_cast %23 : vector<1x8x8x128xf32> to vector<8x8x128xf32>
    %25 = vector.shape_cast %22 : vector<8x8x128xf32> to vector<1x8x8x128xf32>
    tpu.vector_store %arg5[%c0_7, %c0_8, %c0_9, %c0_10], %25 {strides = array<i32>} : memref<1x8x8x128xf32, #tpu.memory_space<vmem>>, vector<1x8x8x128xf32>,
    return
  }
  func.func @transform_0(%arg0: i32, %arg1: i32) -> (i32, i32, i32, i32) {
    %c0_i32 = arith.constant 0 : i32
    %c0_i32_0 = arith.constant 0 : i32
    %c0_i32_1 = arith.constant 0 : i32
    return %arg1, %arg0, %c0_i32, %c0_i32_0 : i32, i32, i32, i32
  }
  func.func @transform_1(%arg0: i32, %arg1: i32) -> (i32, i32) {
    %c0_i32 = arith.constant 0 : i32
    %c0_i32_0 = arith.constant 0 : i32
    return %arg0, %c0_i32 : i32, i32
  }
  func.func @transform_2(%arg0: i32, %arg1: i32) -> (i32, i32) {
    %c0_i32 = arith.constant 0 : i32
    %c0_i32_0 = arith.constant 0 : i32
    return %arg0, %c0_i32 : i32, i32
  }
  func.func @transform_3(%arg0: i32, %arg1: i32) -> (i32, i32, i32, i32) {
    %c0_i32 = arith.constant 0 : i32
    %c0_i32_0 = arith.constant 0 : i32
    %c0_i32_1 = arith.constant 0 : i32
    return %arg1, %arg0, %c0_i32, %c0_i32_0 : i32, i32, i32, i32
  }
}

</mosaic_0001>

<bundles_post_ra>
// kernel: tpu_custom_call.1
= control target key start
LH: loop header
LB: loop body
LE: loop exit
PB: predicated region body
PF: predicated region fallthrough
CT: control target
= control target key end

     0   :  { %s1251_s0 = inlined_call_operand.hbm [shape: f32[2,8,8,128], index: 0, kind: input, shape index: {}]   ;;  %s1252_s1 = inlined_call_operand.hbm [shape: f32[8,128], index: 1, kind: input, shape index: {}]   ;;  %s1253_s2 = inlined_call_operand.hbm [shape: f32[8,128], index: 2, kind: input, shape index: {}]   ;;  %s1254_s3 = inlined_call_operand.hbm [shape: f32[2,8,8,128], index: 3, kind: output, shape index: {}]  }
   0x1   :  { %1261 = sst [smem:[#allocation12_spill]] %s1252_s1 }
   0x2   :  { %8 = vsyncpa [#allocation3], 0 }
   0x3   :  { %10 = vsyncpa [#allocation3 + $0x1], 0 }
   0x4   :  { %11 = vsyncpa [#allocation6], 0 }
   0x5   :  { %12 = vsyncpa [#allocation4], 0 }
   0x6   :  { %14 = vsyncpa [#allocation4 + $0x1], 0  ;;  %s969_s12 = smov 0   ;;  %s971_s13 = smov 0  }
   0x7   :  { %s973_s14 = smov 0   ;;  %s975_s15 = smov 0  }
   0x8   :  { %s977_s16 = smov 0   ;;  %s979_s17 = smov 0  }
   0x9 LB: > { %s661_s18 = sadd.s32 4294967295, %s937_s17   ;;  %s662_s19 = sadd.s32 4294967294, %s937_s17   ;;  %s937_s17 = sphi %s979_s17, %s20_s17   ;;  %s933_s16 = sphi %s977_s16, %s1282_s16   ;;  %s929_s15 = sphi %s975_s15, %s1281_s15   ;;  %s925_s14 = sphi %s973_s14, %s1280_s14   ;;  %s921_s13 = sphi %s971_s13, %s1279_s13   ;;  %s917_s12 = sphi %s969_s12, %s1278_s12  }
   0xa   : > { %s41_s20 = sadd.s32 1, %s925_s14  ;;  %p48_p0 = scmp.ne.s32.totalorder %s925_s14, %s921_s13 }
   0xb   : > { %p49_p1 = scmp.eq.s32.totalorder %s937_s17, 0  ;;  %p54_p2 = scmp.ne.s32.totalorder %s921_s13, %s917_s12 }
   0xc   : > { %p1007_p3 = scmp.eq.s32.totalorder %s661_s18, 0  ;;  %p132_p4 = scmp.eq.s32.totalorder %s661_s18, 1 }
   0xd   : > { %p1011_p5 = por %p49_p1, %p48_p0  ;;  %p138_p6 = scmp.eq.s32.totalorder %s662_s19, 1 }
   0xe   : > { %s1262_s21 = scalar_select %p1007_p3, 1, 0 }
   0xf   : > { %p1017_p7 = por %p1007_p3, %p54_p2  ;;  %p1021_p8 = por %p132_p4, %p48_p0 }
  0x10   : > { %p1025_p9 = por %p138_p6, %p54_p2  ;;  %p663_p10 = scmp.ge.s32.totalorder %s937_s17, 1 }
  0x11   : > { %s1264_s23 = scalar_select %p1017_p7, 1, 0 }
  0x12   : > { %s1265_s24 = scalar_select %p1021_p8, 1, 0 }
  0x13   : > { %s1266_s25 = scalar_select %p1025_p9, 1, 0 }
  0x14   : > { %p145_p11 = scmp.lt.s32.totalorder %s937_s17, 3  ;;  %s939_s27 = smov [#allocation5]  }
  0x15   : > { %s160_s28 = sshll.u32 %s939_s27, 4  ;;  %p711_p1 = scmp.lt.s32.totalorder %s937_s17, 2  ;;  %s161_s28 = int_to_ptr.vmem [resolvable:$true] %s160_s28 }
  0x16   : > { %p1032_p13 = pnand %p663_p10, %p145_p11  ;;  %s940_s30 = smov [#allocation7]  }
  0x17   : > { %p1041_p4 = pnand %p711_p1, %p1011_p5  ;;  %s173_s4 = sshll.u32 %s940_s30, 4  ;;  %s174_s4 = int_to_ptr.vmem [resolvable:$true] %s173_s4 }
  0x18   : > { %s1267_s26 = scalar_select %p1032_p13, 1, 0 }
  0x19   : > { %p694_p0 = pneg %p1032_p13  ;;  %s784_s6 = scalar_lea.vmem %s161_s28, 128 }
  0x1a   : > { %s1268_s29 = scalar_select %p1041_p4, 1, 0 }
  0x1b   : > { %p1047_p2 = pnand %p694_p0, %p1007_p3  ;;  %p785_p10 = scmp.ne.s32.totalorder %s161_s28, %s784_s6 }
  0x1c   : > { %p792_p1 = scmp.lt.s32.totalorder %s161_s28, %s161_s28  ;;  %p793_p12 = scmp.lt.s32.totalorder %s784_s6, %s784_s6 }
  0x1d   : > { %p775_p6 = pneg %p1047_p2 }
  0x1e   : > { %p794_p9 = por %p793_p12, %p792_p1 }
  0x1f   : > { %p787_p5 = pnand %p785_p10, %p775_p6 }
  0x21   : > { %p788_p11 = pneg %p787_p5 }
  0x23   : > { %p795_p8 = pnand %p794_p9, %p788_p11 }
  0x25   : > { %798 = shalt.err (!%p795_p8)
}
  0x26   : > { %s1270_s1 = sld [smem:[#allocation12_spill]]  ;;  %s810_s9 = scalar_lea.vmem %s174_s4, 128 }
  0x27   : > { %p811_p0 = scmp.ne.s32.totalorder %s174_s4, %s810_s9  ;;  %p818_p10 = scmp.lt.s32.totalorder %s174_s4, %s174_s4 }
  0x28   : > { %p819_p5 = scmp.lt.s32.totalorder %s810_s9, %s810_s9 }
  0x29   : > { %p813_p3 = pnand %p811_p0, %p775_p6 }
  0x2a   : > { %p820_p13 = por %p819_p5, %p818_p10 }
  0x2b   : > { %p814_p7 = pneg %p813_p3 }
  0x2c   : > { %697 = dma.hbm_to_vmem [thread:$0]  (!%p1047_p2), %s1270_s1, 128, %s161_s28, [#allocation6]  }
  0x2d   : > { %p821_p4 = pnand %p820_p13, %p814_p7 }
  0x2f   : > { %824 = shalt.err (!%p821_p4)
}
  0x30   : > { %700 = dma.hbm_to_vmem [thread:$0]  (!%p1047_p2), %s1253_s2, 128, %s174_s4, [#allocation6]  }
  0x31   : > { %s29_s18 = sadd.s32 1, %s933_s16  ;;  %s184_s19 = sand.u32 1, %s925_s14  }
  0x32   : > { %p30_p3 = scmp.ge.s32.totalorder %s29_s18, 2  ;;  %s667_s22 = sshll.u32 %s184_s19, 6 }
  0x33   : > { %s680_s27 = sshll.u32 %s933_s16, 10  ;;  %s188_s7 = scalar_lea.vmem [#allocation2], %s667_s22 }
  0x34   : > { %s1284_s18 = smov (%p30_p3, %s29_s18), 0  ;;  %s196_s5 = scalar_lea.hbm %s1251_s0, %s680_s27 }
  0x35   : > { %s36_s6 = ssub.s32 %s933_s16, %s1284_s18  ;;  %s197_s8 = sshll.u32 %s188_s7, 4  ;;  %s198_s8 = int_to_ptr.vmem [resolvable:$true] %s197_s8 }
  0x36   : > { %p39_p7 = scmp.eq.s32.totalorder %s36_s6, 0  ;;  %s185_s4 = scalar_lea.sflag [#allocation3], %s184_s19 }
  0x37   : > { %p1271_p8 = scmp.ne.s32.totalorder %s1268_s29, 0  ;;  %s838_s10 = scalar_lea.vmem %s198_s8, 1024 }
  0x38   : > { %s1082_s9 = scalar_select %p39_p7, %s925_s14, %s41_s20  }
  0x39   : > { %p827_p9 = pneg %p1271_p8  ;;  %p839_p12 = scmp.ne.s32.totalorder %s198_s8, %s838_s10 }
  0x3a   : > { %s941_s11 = smov [#allocation2]  }
  0x3b   : > { %p841_p13 = pnand %p839_p12, %p827_p9  ;;  %s843_s1 = sshll.u32 %s941_s11, 4  ;;  %s844_s1 = int_to_ptr.vmem [resolvable:$false] %s843_s1 }
  0x3c   : > { %s845_s28 = scalar_lea.vmem %s844_s1, 2048  ;;  %p846_p2 = scmp.lt.s32.totalorder %s198_s8, %s844_s1 }
  0x3d   : > { %p842_p4 = pneg %p841_p13  ;;  %p847_p6 = scmp.lt.s32.totalorder %s845_s28, %s838_s10 }
  0x3f   : > { %p848_p11 = por %p847_p6, %p846_p2 }
  0x41   : > { %p849_p1 = pnand %p848_p11, %p842_p4 }
  0x43   : > { %852 = shalt.err (!%p849_p1)
}
  0x44   : > { %s942_s22 = smov 128   ;;  %s943_s20 = smov 8  }
  0x45   : > { %704 = dma.hbm_to_vmem [thread:$0]  (!%p1271_p8), %s196_s5, 1024, %s198_s8, %s185_s4, %s942_s22, %s942_s22, %s943_s20  }
  0x46   : > { %p1272_p0 = scmp.ne.s32.totalorder %s1267_s26, 0 }
  0x47   : > { %s1091_s19 = sand.u32 (!%p1272_p0), 1, %s921_s13   ;;  %p1273_p10 = scmp.ne.s32.totalorder (!%p1272_p0), %s1264_s23, 0 }
  0x48   : > { %209 = sbr.rel (%p1272_p0) target bundleno = 359 (0x167), region = 32  ;;  %s671_s1 = sshll.u32 (!%p1272_p0), %s1091_s19, 6 }
  0x49   : > { %s212_s27 = scalar_lea.sflag (!%p1272_p0), [#allocation3], %s1091_s19  ;;  %s1097_s30 = scalar_lea.vmem (!%p1272_p0), [#allocation2], %s671_s1 }
  0x4d   : > { %904 = dma.done.wait (%p1273_p10), %s212_s27, 1024  }
  0x4e   : > { %906 = vsyncadd (%p1273_p10), %s212_s27, 4294966272  ;;  %p1274_p5 = scmp.ne.s32.totalorder %s1262_s21, 0 }
  0x50   : > { %908 = dma.done.wait (%p1274_p5), [#allocation6], 256  }
  0x51   : > { %910 = vsyncadd (%p1274_p5), [#allocation6], 4294967040  ;;  %v262_v0 = vlaneseq  ;;  %v944_v1 = vmov 1966171168   ;;  %v307_v6 = vld [vmem:[#allocation7] sm:$0xff]  ;;  %s945_s21 = smov 64  }
  0x52   : > { %v260_v2 = vunpack.c.l.s4 %v944_v1  ;;  %v309_v9 = vcombine.high %v307_v6, %v307_v6  ;;  %v256_v29 = vld [vmem:[#allocation5] sm:$0xff]  ;;  %v250_v37 = vld [vmem:[%s1097_s30 + $0x10] sm:$0xff]  ;;  %v249_v42 = vld [vmem:[%s1097_s30 + $0x8] sm:$0xff]  ;;  %vm518_vm0 = vcmask 523264   ;;  %s1175_s23 = scalar_lea.vmem [#allocation8], %s671_s1  ;;  %s681_s26 = sshll.u32 %s929_s15, 10 }
  0x53   : > { %v263_v3 = vshrl.u32 %v262_v0, 7  ;;  %v258_v30 = vcombine.high %v256_v29, %v256_v29  ;;  %v248_v33 = vld [vmem:[%s1097_s30] sm:$0xff]  ;;  %v254_v46 = vld [vmem:[%s1097_s30 + $0x30] sm:$0xff]  ;;  %v255_v47 = vld [vmem:[%s1097_s30 + $0x38] sm:$0xff]  ;;  %s551_s29 = sshll.u32 %s1175_s23, 4  ;;  %s1199_s7 = scalar_lea.hbm %s1254_s3, %s681_s26  ;;  %s1201_s29 = int_to_ptr.vmem [resolvable:$true] %s551_s29 }
  0x54   : > { %v261_v4 = vunpack.c.0.s8 %v260_v2  ;;  %v251_v49 = vld [vmem:[%s1097_s30 + $0x18] sm:$0xff]  ;;  %v252_v54 = vld [vmem:[%s1097_s30 + $0x20] sm:$0xff]  ;;  %v253_v57 = vld [vmem:[%s1097_s30 + $0x28] sm:$0xff]  ;;  %s536_s15 = scalar_lea.sflag [#allocation4], %s1091_s19  ;;  %s853_s8 = scalar_lea.vmem %s1201_s29, 1024 }
  0x55   : > { %v1110_v8 = vsub.s32 0, %v263_v3  ;;  %p854_p3 = scmp.ne.s32.totalorder %s1201_s29, %s853_s8  ;;  %p1275_p7 = scmp.ne.s32.totalorder %s1265_s24, 0 }
  0x56   : > { %v1107_v5 = vsub.s32 %v261_v4, %v263_v3  ;;  %s946_s4 = smov [#allocation8]  }
  0x57   : > { %p855_p8 = pnand %p854_p3, %p1275_p7  ;;  %s857_s10 = sshll.u32 %s946_s4, 4  ;;  %s858_s10 = int_to_ptr.vmem [resolvable:$false] %s857_s10 }
  0x58   : > { %v316_v7 = vrot.slane %v307_v6, %v1107_v5  ;;  %v323_v12 = vrot.slane %v309_v9, %v1107_v5  ;;  %v272_v31 = vrot.slane %v258_v30, %v1107_v5  ;;  %v265_v1 = vrot.slane %v256_v29, %v1107_v5  ;;  %s859_s11 = scalar_lea.vmem %s858_s10, 2048  ;;  %p860_p12 = scmp.lt.s32.totalorder %s1201_s29, %s858_s10 }
  0x59   : > { %p856_p9 = pneg %p855_p8  ;;  %p861_p13 = scmp.lt.s32.totalorder %s859_s11, %s853_s8 }
  0x5a   : > { %v332_v10 = vrot.slane %v316_v7, %v1107_v5  ;;  %v324_v11 = vcombine.high %v316_v7, %v316_v7  ;;  %v325_v16 = vcombine.high %v323_v12, %v323_v12  ;;  %v339_v20 = vrot.slane %v323_v12, %v1107_v5 }
  0x5b   : > { %v274_v32 = vcombine.high %v272_v31, %v272_v31  ;;  %v288_v34 = vrot.slane %v272_v31, %v1107_v5  ;;  %v281_v2 = vrot.slane %v265_v1, %v1107_v5  ;;  %v273_v3 = vcombine.high %v265_v1, %v265_v1  ;;  %p862_p4 = por %p861_p13, %p860_p12 }
  0x5c   : > { %v409_v13 = vrot.slane %v332_v10, %v1110_v8  ;;  %v354_v14 = vcombine.high %v332_v10, %v332_v10  ;;  %v346_v15 = vrot.slane %v324_v11, %v1107_v5  ;;  %v353_v22 = vrot.slane %v325_v16, %v1107_v5 }
  0x5d   : > { %v425_v23 = vrot.slane %v339_v20, %v1110_v8  ;;  %v355_v24 = vcombine.high %v339_v20, %v339_v20  ;;  %v1137_v35 = vrot.slane %v274_v32, %v1107_v5  ;;  %v304_v39 = vcombine.high %v288_v34, %v288_v34  ;;  %p863_p2 = pnand %p862_p4, %p856_p9 }
  0x5e   : > { %438 = vrot.lane.b32.xlu0 %v409_v13, %s945_s21  ;;  %v417_v17 = vrot.slane %v354_v14, %v1110_v8  ;;  %v413_v18 = vrot.slane %v346_v15, %v1110_v8  ;;  %v356_v19 = vcombine.high %v346_v15, %v346_v15  ;;  %v429_v25 = vrot.slane %v353_v22, %v1110_v8 }
  0x5f   : > { %v357_v26 = vcombine.high %v353_v22, %v353_v22  ;;  %v433_v27 = vrot.slane %v355_v24, %v1110_v8  ;;  %v306_v38 = vcombine.high %v1137_v35, %v1137_v35  ;;  %v385_v44 = vrot.slane %v304_v39, %v1110_v8 }
  0x60   : > { %442 = vrot.lane.b32.xlu1 %v417_v17, %s945_s21  ;;  %v421_v21 = vrot.slane %v356_v19, %v1110_v8  ;;  %v361_v4 = vrot.slane %v281_v2, %v1110_v8  ;;  %v303_v6 = vcombine.high %v281_v2, %v281_v2  ;;  %v295_v7 = vrot.slane %v273_v3, %v1107_v5 }
  0x61   : > { %v437_v28 = vrot.slane %v357_v26, %v1110_v8  ;;  %v389_v43 = vrot.slane %v306_v38, %v1110_v8  ;;  %v1151_v51 = vmul.f32 %v385_v44, %v254_v46  ;;  %v377_v14 = vrot.slane %v288_v34, %v1110_v8 }
  0x62   : > { %440 = vrot.lane.b32.xlu0 %v413_v18, %s945_s21  ;;  %v305_v9 = vcombine.high %v295_v7, %v295_v7  ;;  %v398_v10 = vmul.f32 %v361_v4, %v248_v33  ;;  %v369_v11 = vrot.slane %v303_v6, %v1110_v8  ;;  %v365_v12 = vrot.slane %v295_v7, %v1110_v8 }
  0x63   : > { %v1149_v50 = vmul.f32 %v389_v43, %v255_v47  ;;  %v381_v22 = vrot.slane %v1137_v35, %v1110_v8 }
  0x64   : > { %444 = vrot.lane.b32.xlu1 %v421_v21, %s945_s21  ;;  %v373_v13 = vrot.slane %v305_v9, %v1110_v8  ;;  %v400_v16 = vmul.f32 %v369_v11, %v250_v37  ;;  %v399_v17 = vmul.f32 %v365_v12, %v249_v42  ;;  %v402_v21 = vmul.f32 %v377_v14, %v252_v54 }
  0x65   : > { %v403_v8 = vmul.f32 %v381_v22, %v253_v57 }
  0x66   : > { %446 = vrot.lane.b32.xlu0 %v425_v23, %s945_s21  ;;  %v401_v5 = vmul.f32 %v373_v13, %v251_v49 }
  0x68   : > { %448 = vrot.lane.b32.xlu1 %v429_v25, %s945_s21 }
  0x6a   : > { %450 = vrot.lane.b32.xlu0 %v433_v27, %s945_s21 }
  0x6c   : > { %452 = vrot.lane.b32.xlu1 %v437_v28, %s945_s21 }
  0xd0   : > { %v439_v36 = vpop.permute.xlu0 %438 }
  0xd1   : > { %v462_v40 = vmul.f32 %v439_v36, %v248_v33 }
  0xd2   : > { %v443_v41 = vpop.permute.xlu1 %442 }
  0xd3   : > { %478 = vrot.lane.b32.xlu0 %v462_v40, %s945_s21  ;;  %v464_v45 = vmul.f32 %v443_v41, %v250_v37 }
  0xd4   : > { %v441_v48 = vpop.permute.xlu0 %440 }
  0xd5   : > { %v463_v52 = vmul.f32 %v441_v48, %v249_v42 }
  0xd6   : > { %v445_v53 = vpop.permute.xlu1 %444 }
  0xd7   : > { %480 = vrot.lane.b32.xlu1 %v463_v52, %s945_s21  ;;  %482 = vrot.lane.b32.xlu0 %v464_v45, %s945_s21  ;;  %v465_v55 = vmul.f32 %v445_v53, %v251_v49 }
  0xd8   : > { %v447_v56 = vpop.permute.xlu0 %446 }
  0xd9   : > { %v466_v58 = vmul.f32 %v447_v56, %v252_v54 }
  0xda   : > { %v449_v59 = vpop.permute.xlu1 %448 }
  0xdb   : > { %484 = vrot.lane.b32.xlu1 %v465_v55, %s945_s21  ;;  %v467_v60 = vmul.f32 %v449_v59, %v253_v57  ;;  %486 = vrot.lane.b32.xlu0 %v466_v58, %s945_s21 }
  0xdc   : > { %v451_v61 = vpop.permute.xlu0 %450 }
  0xdd   : > { %v468_v62 = vmul.f32 %v451_v61, %v254_v46 }
  0xde   : > { %v453_v63 = vpop.permute.xlu1 %452 }
  0xdf   : > { %488 = vrot.lane.b32.xlu1 %v467_v60, %s945_s21  ;;  %v469_v0 = vmul.f32 %v453_v63, %v255_v47  ;;  %490 = vrot.lane.b32.xlu0 %v468_v62, %s945_s21 }
  0xe3   : > { %492 = vrot.lane.b32.xlu1 %v469_v0, %s945_s21 }
 0x145   : > { %v479_v15 = vpop.permute.xlu0 %478 }
 0x146   : > { %v502_v18 = vsub.f32 %v398_v10, %v479_v15  ;;  %v510_v19 = vadd.f32 %v479_v15, %v398_v10 }
 0x148   : > { %v519_v20 = vsel %vm518_vm0, %v502_v18, %v510_v19 }
 0x149   : > { %527 = vst [vmem:[%s1175_s23] sm:$0xff] %v519_v20  ;;  %v481_v23 = vpop.permute.xlu1 %480  ;;  %v483_v24 = vpop.permute.xlu0 %482 }
 0x14a   : > { %v503_v25 = vsub.f32 %v399_v17, %v481_v23  ;;  %v511_v26 = vadd.f32 %v481_v23, %v399_v17  ;;  %v504_v27 = vsub.f32 %v400_v16, %v483_v24  ;;  %v512_v28 = vadd.f32 %v483_v24, %v400_v16 }
 0x14c   : > { %v520_v29 = vsel %vm518_vm0, %v503_v25, %v511_v26  ;;  %v521_v30 = vsel %vm518_vm0, %v504_v27, %v512_v28 }
 0x14d   : > { %528 = vst [vmem:[%s1175_s23 + $0x8] sm:$0xff] %v520_v29  ;;  %529 = vst [vmem:[%s1175_s23 + $0x10] sm:$0xff] %v521_v30  ;;  %v485_v31 = vpop.permute.xlu1 %484  ;;  %v487_v32 = vpop.permute.xlu0 %486 }
 0x14e   : > { %v505_v33 = vsub.f32 %v401_v5, %v485_v31  ;;  %v513_v34 = vadd.f32 %v485_v31, %v401_v5  ;;  %v506_v35 = vsub.f32 %v402_v21, %v487_v32  ;;  %v514_v36 = vadd.f32 %v487_v32, %v402_v21 }
 0x150   : > { %v522_v37 = vsel %vm518_vm0, %v505_v33, %v513_v34  ;;  %v523_v38 = vsel %vm518_vm0, %v506_v35, %v514_v36 }
 0x151   : > { %530 = vst [vmem:[%s1175_s23 + $0x18] sm:$0xff] %v522_v37  ;;  %v489_v39 = vpop.permute.xlu1 %488  ;;  %531 = vst [vmem:[%s1175_s23 + $0x20] sm:$0xff] %v523_v38  ;;  %v491_v40 = vpop.permute.xlu0 %490 }
 0x152   : > { %v507_v41 = vsub.f32 %v403_v8, %v489_v39  ;;  %v515_v42 = vadd.f32 %v489_v39, %v403_v8  ;;  %v508_v43 = vsub.f32 %v1151_v51, %v491_v40  ;;  %v516_v44 = vadd.f32 %v491_v40, %v1151_v51 }
 0x154   : > { %v524_v45 = vsel %vm518_vm0, %v507_v41, %v515_v42  ;;  %v525_v46 = vsel %vm518_vm0, %v508_v43, %v516_v44 }
 0x155   : > { %532 = vst [vmem:[%s1175_s23 + $0x28] sm:$0xff] %v524_v45  ;;  %v493_v47 = vpop.permute.xlu1 %492  ;;  %533 = vst [vmem:[%s1175_s23 + $0x30] sm:$0xff] %v525_v46 }
 0x156   : > { %v509_v48 = vsub.f32 %v1149_v50, %v493_v47  ;;  %v517_v49 = vadd.f32 %v493_v47, %v1149_v50 }
 0x158   : > { %v526_v51 = vsel %vm518_vm0, %v509_v48, %v517_v49 }
 0x159   : > { %534 = vst [vmem:[%s1175_s23 + $0x38] sm:$0xff] %v526_v51 }
 0x15a   : > { %866 = shalt.err (!%p863_p2)
}
 0x15b   : > { %s867_s28 = scalar_lea.hbm %s1199_s7, 1024  ;;  %s871_s1 = scalar_lea.hbm %s1254_s3, 2048 }
 0x15c   : > { %p868_p6 = scmp.ne.s32.totalorder %s1199_s7, %s867_s28  ;;  %p872_p0 = scmp.lt.s32.totalorder %s1199_s7, %s1254_s3 }
 0x15d   : > { %p873_p10 = scmp.lt.s32.totalorder %s871_s1, %s867_s28 }
 0x15e   : > { %p869_p11 = pnand %p868_p6, %p1275_p7 }
 0x15f   : > { %p874_p5 = por %p873_p10, %p872_p0 }
 0x160   : > { %p870_p1 = pneg %p869_p11 }
 0x162   : > { %p875_p3 = pnand %p874_p5, %p870_p1 }
 0x164   : > { %878 = shalt.err (!%p875_p3)
}
 0x165   : > { %s947_s21 = smov 128   ;;  %s948_s23 = smov 8  }
 0x166   : > { %692 = dma.vmem_to_hbm [thread:$0]  (%p1275_p7), %s1201_s29, 1024, %s1199_s7, %s536_s15, %s947_s21, %s947_s21, %s948_s23  }
 0x167 PF: > { %s566_s26 = sand.u32 1, %s917_s12   ;;  %p1276_p8 = scmp.ne.s32.totalorder %s1266_s25, 0 }
 0x168   : > { %p1277_p9 = scmp.ge.s32.totalorder %s937_s17, 2  ;;  %s567_s5 = scalar_lea.sflag [#allocation4], %s566_s26 }
 0x16a   : > { %p706_p12 = pnand %p1277_p9, %p1276_p8 }
 0x16c   : > { %p707_p13 = pneg %p706_p12 }
 0x16e   : > { %912 = dma.done.wait (%p707_p13), %s567_s5, 1024  }
 0x16f   : > { %914 = vsyncadd (%p707_p13), %s567_s5, 4294966272  ;;  %s20_s17 = sadd.s32 1, %s937_s17   ;;  %s1278_s12 = smov %s921_s13 }
 0x170   : > { %p17_p4 = scmp.ge.s32.totalorder %s20_s17, 4   ;;  %s1279_s13 = smov %s925_s14 }
 0x171   : > { %s1280_s14 = smov %s1082_s9  ;;  %s1281_s15 = smov %s933_s16 }
 0x172   : > { %s1282_s16 = smov %s1284_s18  ;;  %19 = sbr.rel (!%p17_p4) target bundleno = 9 (0x9), region = 87 }
 0x177   :  { %572 = vsyncpa [#allocation3], 1 }
 0x178   :  { %574 = vsyncpa [#allocation3 + $0x1], 1 }
 0x179   :  { %575 = vsyncpa [#allocation6], 1 }
 0x17a   :  { %576 = vsyncpa [#allocation4], 1 }
 0x17b   :  { %578 = vsyncpa [#allocation4 + $0x1], 1 }

</bundles_post_ra>
